<compile_context>
chip_gen: v7x
topology: tpu7x:2x2x1
jax: 0.10.0
libtpu: 0.0.40
codegen_flags: <defaults>
</compile_context>

<pallas_src>
import jax
import jax.numpy as jnp
from jax.experimental import pallas as pl
from jax.experimental.pallas import tpu as pltpu


HIDDEN1 = 64
HIDDEN2 = 32
TILE_B_MAX = 4096       # large tiles amortize per-step overhead; VMEM stays small
MEGACORE_SPLIT = 2048   # for batches >= 2*this, keep >= 2 grid steps (v7x megacore)


def _round_up(x, m):
    return ((x + m - 1) // m) * m


def _cdiv(a, b):
    return -(-a // b)


def dqn_kernel(x_ref, w1_ref, b1_ref, w2_ref, b2_ref, w3_ref, b3_ref, o_ref):
    # Cast x to bf16 in-kernel (VPU cast, free under the DMA) for the MXU.
    xb = x_ref[...].astype(jnp.bfloat16)
    # Layer 1: Linear(input_dim, 64) + ReLU.  bf16 matmul, f32 accumulate,
    # bias/ReLU in f32 on the accumulator (works on all gens incl. v5e).
    h1 = jnp.dot(xb, w1_ref[...], preferred_element_type=jnp.float32)
    h1 = jnp.maximum(h1 + b1_ref[...], 0.0).astype(jnp.bfloat16)
    # Layer 2: Linear(64, 32) + ReLU
    h2 = jnp.dot(h1, w2_ref[...], preferred_element_type=jnp.float32)
    h2 = jnp.maximum(h2 + b2_ref[...], 0.0).astype(jnp.bfloat16)
    # Layer 3: Linear(32, action_dim) -- true width, no activation.
    q = jnp.dot(h2, w3_ref[...], preferred_element_type=jnp.float32)
    o_ref[...] = (q + b3_ref[...]).astype(o_ref.dtype)


def pack_params(params):
    """One-time parameter packing: bf16 weights, f32 biases (do this outside the
    per-call forward path so the casts are not repeated every inference call)."""
    w1, b1, w2, b2, w3, b3 = params
    return (
        w1.astype(jnp.bfloat16),
        b1.astype(jnp.float32),
        w2.astype(jnp.bfloat16),
        b2.astype(jnp.float32),
        w3.astype(jnp.bfloat16),
        b3.astype(jnp.float32),
    )


@jax.jit
def dqn_forward(x, packed_params):
    """Batch-tiled Pallas forward pass. Returns (batch, action_dim) float32."""
    w1b, b1f, w2b, b2f, w3b, b3f = packed_params
    batch, input_dim = x.shape
    action_dim = w3b.shape[1]

    # --- tile sizing: balanced tiles, multiple of 8 sublanes ------------------
    n_tiles = max(1, _cdiv(batch, TILE_B_MAX))
    if batch >= 2 * MEGACORE_SPLIT:
        # keep >= 2 grid steps for large batches so v7x's 2 TCs both get work
        n_tiles = max(n_tiles, 2)
    tile_b = _round_up(_cdiv(batch, n_tiles), 8)
    batch_p = _round_up(batch, tile_b)

    # --- batch padding only when actually needed (no wrapper-side dtype cast) --
    x_p = x
    if batch_p != batch:
        x_p = jnp.pad(x, ((0, batch_p - batch), (0, 0)))

    grid = (batch_p // tile_b,)

    # Weights / biases: same block every iteration -> stay VMEM-resident.
    resident = lambda shape: pl.BlockSpec(shape, lambda i: (0, 0))

    flops = 2 * batch_p * (
        input_dim * HIDDEN1 + HIDDEN1 * HIDDEN2 + HIDDEN2 * action_dim
    )
    bytes_accessed = (
        batch_p * input_dim * 4                    # x (f32 in)
        + batch_p * action_dim * 4                 # out (f32)
        + (input_dim * HIDDEN1 + HIDDEN1 * HIDDEN2 + HIDDEN2 * action_dim) * 2
        + (HIDDEN1 + HIDDEN2 + action_dim) * 4     # biases (f32)
    )

    out = pl.pallas_call(
        dqn_kernel,
        out_shape=jax.ShapeDtypeStruct((batch_p, action_dim), jnp.float32),
        grid_spec=pltpu.PrefetchScalarGridSpec(
            num_scalar_prefetch=0,
            grid=grid,
            in_specs=[
                pl.BlockSpec((tile_b, input_dim), lambda i: (i, 0)),  # x tile
                resident((input_dim, HIDDEN1)),                        # w1
                resident((1, HIDDEN1)),                                # b1
                resident((HIDDEN1, HIDDEN2)),                          # w2
                resident((1, HIDDEN2)),                                # b2
                resident((HIDDEN2, action_dim)),                       # w3
                resident((1, action_dim)),                             # b3
            ],
            out_specs=pl.BlockSpec((tile_b, action_dim), lambda i: (i, 0)),
        ),
        compiler_params=pltpu.CompilerParams(
            dimension_semantics=("parallel",),
        ),
        cost_estimate=pl.CostEstimate(
            flops=flops, transcendentals=0, bytes_accessed=bytes_accessed
        ),
    )(x_p, w1b, b1f, w2b, b2f, w3b, b3f)

    if batch_p != batch:
        out = out[:batch]
    return out


def init_params(key, input_dim, action_dim):
    """Deterministic synthetic parameters (PyTorch Linear shapes, pre-transposed)."""
    ks = jax.random.split(key, 6)
    w1 = jax.random.normal(ks[0], (input_dim, HIDDEN1), jnp.float32) * 0.1
    b1 = jax.random.normal(ks[1], (1, HIDDEN1), jnp.float32) * 0.1
    w2 = jax.random.normal(ks[2], (HIDDEN1, HIDDEN2), jnp.float32) * 0.1
    b2 = jax.random.normal(ks[3], (1, HIDDEN2), jnp.float32) * 0.1
    w3 = jax.random.normal(ks[4], (HIDDEN2, action_dim), jnp.float32) * 0.1
    b3 = jax.random.normal(ks[5], (1, action_dim), jnp.float32) * 0.1
    return (w1, b1, w2, b2, w3, b3)


def dqn_reference(x, params):
    """Pure-JAX reference with matching bf16-matmul / f32-accumulate numerics."""
    w1, b1, w2, b2, w3, b3 = params
    xb = x.astype(jnp.bfloat16)
    h1 = jnp.dot(xb, w1.astype(jnp.bfloat16), preferred_element_type=jnp.float32)
    h1 = jnp.maximum(h1 + b1, 0.0).astype(jnp.bfloat16)
    h2 = jnp.dot(h1, w2.astype(jnp.bfloat16), preferred_element_type=jnp.float32)
    h2 = jnp.maximum(h2 + b2, 0.0).astype(jnp.bfloat16)
    q = jnp.dot(h2, w3.astype(jnp.bfloat16), preferred_element_type=jnp.float32)
    return q + b3


if __name__ == "__main__":
    key = jax.random.PRNGKey(0)
    k_x, k_p = jax.random.split(key)

    batch = 8
    input_dim = 16
    action_dim = 4

    x = jax.random.normal(k_x, (batch, input_dim), jnp.float32)
    params = init_params(k_p, input_dim, action_dim)
    packed = pack_params(params)   # one-time packing, outside the forward path

    out = dqn_forward(x, packed)
    out = jax.block_until_ready(out)

    ref = dqn_reference(x, params)
    assert out.shape == (batch, action_dim)
    assert jnp.allclose(out, ref, atol=2e-2, rtol=2e-2), "mismatch vs reference"

    print("KERNEL_OK")
</pallas_src>

<mosaic_0001>
module attributes {stable_mosaic.version = 11 : i64} {
  func.func @dqn_kernel(%arg0: i32, %arg1: memref<8x16xf32, #tpu.memory_space<vmem>>, %arg2: memref<16x64xbf16, #tpu.memory_space<vmem>>, %arg3: memref<1x64xf32, #tpu.memory_space<vmem>>, %arg4: memref<64x32xbf16, #tpu.memory_space<vmem>>, %arg5: memref<1x32xf32, #tpu.memory_space<vmem>>, %arg6: memref<32x4xbf16, #tpu.memory_space<vmem>>, %arg7: memref<1x4xf32, #tpu.memory_space<vmem>>, %arg8: memref<8x4xf32, #tpu.memory_space<vmem>>) attributes {dimension_semantics = [#tpu.dimension_semantics<parallel>], iteration_bounds = array<i64: 1>, scalar_prefetch = 0 : i64, scratch_operands = 0 : i64, tpu.core_type = #tpu.core_type<tc>, window_params = [{transform_indices = @transform_0, window_bounds = array<i64: 8, 16>}, {pipeline_mode = #tpu.pipeline_mode<synchronous>, transform_indices = @transform_1, window_bounds = array<i64: 16, 64>}, {pipeline_mode = #tpu.pipeline_mode<synchronous>, transform_indices = @transform_2, window_bounds = array<i64: 1, 64>}, {pipeline_mode = #tpu.pipeline_mode<synchronous>, transform_indices = @transform_3, window_bounds = array<i64: 64, 32>}, {pipeline_mode = #tpu.pipeline_mode<synchronous>, transform_indices = @transform_4, window_bounds = array<i64: 1, 32>}, {pipeline_mode = #tpu.pipeline_mode<synchronous>, transform_indices = @transform_5, window_bounds = array<i64: 32, 4>}, {pipeline_mode = #tpu.pipeline_mode<synchronous>, transform_indices = @transform_6, window_bounds = array<i64: 1, 4>}, {transform_indices = @transform_7, window_bounds = array<i64: 8, 4>}]} {
    %c0 = arith.constant 0 : index
    %c0_0 = arith.constant 0 : index
    %0 = vector.load %arg1[%c0, %c0_0] : memref<8x16xf32, #tpu.memory_space<vmem>>, vector<8x16xf32>
    %1 = arith.truncf %0 : vector<8x16xf32> to vector<8x16xbf16>
    %c0_1 = arith.constant 0 : index
    %c0_2 = arith.constant 0 : index
    %2 = vector.load %arg2[%c0_1, %c0_2] : memref<16x64xbf16, #tpu.memory_space<vmem>>, vector<16x64xbf16>
    %cst = arith.constant dense<0.000000e+00> : vector<8x64xf32>
    %3 = tpu.matmul %1, %2, %cst {dimension_numbers = #tpu.dot_dimension_numbers<[1], [0], [0], [1], [0, 0, 1, 1], [], []>} : vector<8x16xbf16>, vector<16x64xbf16>, vector<8x64xf32> -> vector<8x64xf32>
    %c0_3 = arith.constant 0 : index
    %c0_4 = arith.constant 0 : index
    %4 = vector.load %arg3[%c0_3, %c0_4] : memref<1x64xf32, #tpu.memory_space<vmem>>, vector<1x64xf32>
    %5 = vector.broadcast %4 : vector<1x64xf32> to vector<8x64xf32>
    %6 = arith.addf %3, %5 : vector<8x64xf32>
    %cst_5 = arith.constant 0.000000e+00 : f32
    %7 = vector.broadcast %cst_5 : f32 to vector<8x64xf32>
    %8 = arith.maximumf %6, %7 : vector<8x64xf32>
    %9 = arith.truncf %8 : vector<8x64xf32> to vector<8x64xbf16>
    %c0_6 = arith.constant 0 : index
    %c0_7 = arith.constant 0 : index
    %10 = vector.load %arg4[%c0_6, %c0_7] : memref<64x32xbf16, #tpu.memory_space<vmem>>, vector<64x32xbf16>
    %cst_8 = arith.constant dense<0.000000e+00> : vector<8x32xf32>
    %11 = tpu.matmul %9, %10, %cst_8 {dimension_numbers = #tpu.dot_dimension_numbers<[1], [0], [0], [1], [0, 0, 1, 1], [], []>} : vector<8x64xbf16>, vector<64x32xbf16>, vector<8x32xf32> -> vector<8x32xf32>
    %c0_9 = arith.constant 0 : index
    %c0_10 = arith.constant 0 : index
    %12 = vector.load %arg5[%c0_9, %c0_10] : memref<1x32xf32, #tpu.memory_space<vmem>>, vector<1x32xf32>
    %13 = vector.broadcast %12 : vector<1x32xf32> to vector<8x32xf32>
    %14 = arith.addf %11, %13 : vector<8x32xf32>
    %cst_11 = arith.constant 0.000000e+00 : f32
    %15 = vector.broadcast %cst_11 : f32 to vector<8x32xf32>
    %16 = arith.maximumf %14, %15 : vector<8x32xf32>
    %17 = arith.truncf %16 : vector<8x32xf32> to vector<8x32xbf16>
    %c0_12 = arith.constant 0 : index
    %c0_13 = arith.constant 0 : index
    %18 = vector.load %arg6[%c0_12, %c0_13] : memref<32x4xbf16, #tpu.memory_space<vmem>>, vector<32x4xbf16>
    %cst_14 = arith.constant dense<0.000000e+00> : vector<8x4xf32>
    %19 = tpu.matmul %17, %18, %cst_14 {dimension_numbers = #tpu.dot_dimension_numbers<[1], [0], [0], [1], [0, 0, 1, 1], [], []>} : vector<8x32xbf16>, vector<32x4xbf16>, vector<8x4xf32> -> vector<8x4xf32>
    %c0_15 = arith.constant 0 : index
    %c0_16 = arith.constant 0 : index
    %20 = vector.load %arg7[%c0_15, %c0_16] : memref<1x4xf32, #tpu.memory_space<vmem>>, vector<1x4xf32>
    %21 = vector.broadcast %20 : vector<1x4xf32> to vector<8x4xf32>
    %22 = arith.addf %19, %21 : vector<8x4xf32>
    %c0_17 = arith.constant 0 : index
    %c0_18 = arith.constant 0 : index
    %23 = vector.load %arg8[%c0_17, %c0_18] : memref<8x4xf32, #tpu.memory_space<vmem>>, vector<8x4xf32>
    tpu.vector_store %arg8[%c0_17, %c0_18], %22 {strides = array<i32>} : memref<8x4xf32, #tpu.memory_space<vmem>>, vector<8x4xf32>,
    return
  }
  func.func @transform_0(%arg0: i32) -> (i32, i32) {
    %c0_i32 = arith.constant 0 : i32
    %c0_i32_0 = arith.constant 0 : i32
    return %arg0, %c0_i32 : i32, i32
  }
  func.func @transform_1(%arg0: i32) -> (i32, i32) {
    %c0_i32 = arith.constant 0 : i32
    %c0_i32_0 = arith.constant 0 : i32
    %c0_i32_1 = arith.constant 0 : i32
    return %c0_i32, %c0_i32_0 : i32, i32
  }
  func.func @transform_2(%arg0: i32) -> (i32, i32) {
    %c0_i32 = arith.constant 0 : i32
    %c0_i32_0 = arith.constant 0 : i32
    %c0_i32_1 = arith.constant 0 : i32
    return %c0_i32, %c0_i32_0 : i32, i32
  }
  func.func @transform_3(%arg0: i32) -> (i32, i32) {
    %c0_i32 = arith.constant 0 : i32
    %c0_i32_0 = arith.constant 0 : i32
    %c0_i32_1 = arith.constant 0 : i32
    return %c0_i32, %c0_i32_0 : i32, i32
  }
  func.func @transform_4(%arg0: i32) -> (i32, i32) {
    %c0_i32 = arith.constant 0 : i32
    %c0_i32_0 = arith.constant 0 : i32
    %c0_i32_1 = arith.constant 0 : i32
    return %c0_i32, %c0_i32_0 : i32, i32
  }
  func.func @transform_5(%arg0: i32) -> (i32, i32) {
    %c0_i32 = arith.constant 0 : i32
    %c0_i32_0 = arith.constant 0 : i32
    %c0_i32_1 = arith.constant 0 : i32
    return %c0_i32, %c0_i32_0 : i32, i32
  }
  func.func @transform_6(%arg0: i32) -> (i32, i32) {
    %c0_i32 = arith.constant 0 : i32
    %c0_i32_0 = arith.constant 0 : i32
    %c0_i32_1 = arith.constant 0 : i32
    return %c0_i32, %c0_i32_0 : i32, i32
  }
  func.func @transform_7(%arg0: i32) -> (i32, i32) {
    %c0_i32 = arith.constant 0 : i32
    %c0_i32_0 = arith.constant 0 : i32
    return %arg0, %c0_i32 : i32, i32
  }
}

</mosaic_0001>

<bundles_post_ra>
// kernel: dqn_forward.1
= control target key start
LH: loop header
LB: loop body
LE: loop exit
PB: predicated region body
PF: predicated region fallthrough
CT: control target
= control target key end

     0   :  { %v306_v0 = vmov 0.0   ;;  %vm307_vm0 = vmmov 0   ;;  %vm44_vm1 = vcmask 130048   ;;  %vm129_vm2 = vcmask 523264   ;;  %s384_s1 = inlined_call_operand.vmem [shape: bf16[16,64], index: 1, kind: input, shape index: {}]   ;;  %s385_s0 = inlined_call_operand.vmem [shape: f32[8,16], index: 0, kind: input, shape index: {}]   ;;  %s386_s3 = inlined_call_operand.vmem [shape: bf16[64,32], index: 3, kind: input, shape index: {}]   ;;  %s387_s5 = inlined_call_operand.vmem [shape: bf16[32,4], index: 5, kind: input, shape index: {}]   ;;  %s388_s2 = inlined_call_operand.vmem [shape: f32[1,64], index: 2, kind: input, shape index: {}]   ;;  %s389_s4 = inlined_call_operand.vmem [shape: f32[1,32], index: 4, kind: input, shape index: {}]   ;;  %s390_s6 = inlined_call_operand.vmem [shape: f32[1,4], index: 6, kind: input, shape index: {}]   ;;  %s391_s7 = inlined_call_operand.vmem [shape: f32[8,4], index: 7, kind: output, shape index: {}]  }
   0x1   :  { %271 = vmatprep.subr.bf16.mxu0 %v306_v0  ;;  %v299_v1 = vld [vmem:[%s384_s1] sm:$0xff]   ;;  %273 = vmatprep.mubr.msk.bf16.mxu0 %vm307_vm0, %v306_v0  ;;  %v301_v5 = vld [vmem:[%s386_s3 + $0x8] sm:$0xff]   ;;  %v302_v6 = vld [vmem:[%s386_s3 + $0x10] sm:$0xff]   ;;  %vm198_vm3 = vcmask 261120   ;;  %vm242_vm4 = vcmask 31744  }
   0x2   :  { %v27_v2 = vld [vmem:[%s385_s0] sm:$0xff]  ;;  %277 = vmatprep.subr.bf16.mxu1 %v306_v0  ;;  %285 = vmatprep.mubr.msk.bf16.mxu1 %vm307_vm0, %v306_v0  ;;  %v303_v7 = vld [vmem:[%s386_s3 + $0x18] sm:$0xff]   ;;  %v305_v17 = vld [vmem:[%s387_s5 + $0x8] sm:$0xff]  }
   0x3   :  { %272 = vmatpush3.bf16.msra.mxu0 %v299_v1  ;;  %v28_v3 = vpack.c.bf16 %v27_v2, %v27_v2  ;;  %v300_v4 = vld [vmem:[%s386_s3] sm:$0xff]  }
   0x4   :  { %289 = vmatprep.subr.bf16.mxu0 %v306_v0  ;;  %278 = vmatpush3.bf16.msra.mxu1 %v300_v4  ;;  %v304_v8 = vld [vmem:[%s387_s5] sm:$0xff]  }
   0x5   :  { %279 = vmatprep.subr.bf16.mxu1 %v306_v0  ;;  %v248_v9 = vld [vmem:[%s388_s2] ss:$0 sm:$0xff] }
   0x6   :  { %274 = vmatmul.mubr.msk.bf16.vlgmr.msra.gmra.mrb[0].mxu0 %vm44_vm1, %v28_v3  ;;  %v251_v18 = vld [vmem:[%s389_s4] ss:$0 sm:$0xff] }
   0x7   :  { %293 = vmatprep.mubr.msk.bf16.mxu0 %vm307_vm0, %v306_v0  ;;  %290 = vmatpush3.bf16.msra.mxu0 %v304_v8  ;;  %v257_v26 = vld [vmem:[%s390_s6] ss:$0 sm:$0xff] }
   0x8   :  { %280 = vmatpush3.bf16.msra.mxu1 %v301_v5  ;;  %291 = vmatprep.subr.bf16.mxu0 %v306_v0 }
   0x9   :  { %281 = vmatprep.subr.bf16.mxu1 %v306_v0 }
   0xb   :  { %292 = vmatpush3.bf16.msra.mxu0 %v305_v17 }
   0xc   :  { %282 = vmatpush3.bf16.msra.mxu1 %v302_v6 }
   0xd   :  { %283 = vmatprep.subr.bf16.mxu1 %v306_v0 }
  0x10   :  { %284 = vmatpush3.bf16.msra.mxu1 %v303_v7 }
  0xd9   :  { %v82_v10 = vpop.f32.mrb[0].mxu0 }
  0xda   :  { %v83_v11 = vadd.f32 %v248_v9, %v82_v10  ;;  %v275_v12 = vpop.f32.mrb[1].mxu0 }
  0xdb   :  { %v85_v13 = vpop.f32.mrb[2].mxu0 }
  0xdc   :  { %v88_v14 = vmax.f32 %v83_v11, 0.0  ;;  %v276_v15 = vpop.f32.mrb[3].mxu0 }
  0xde   :  { %v89_v16 = vpack.c.bf16 %v88_v14, %v88_v14 }
  0xe0   :  { %286 = vmatmul.mubr.msk.bf16.vlgmr.msra.gmra.mrb[0].mxu1 %vm129_vm2, %v89_v16 }
 0x1b3   :  { %v167_v19 = vpop.f32.mrb[0].mxu1 }
 0x1b4   :  { %v168_v20 = vadd.f32 %v251_v18, %v167_v19  ;;  %v287_v21 = vpop.f32.mrb[1].mxu1 }
 0x1b5   :  { %v170_v22 = vpop.f32.mrb[2].mxu1 }
 0x1b6   :  { %v173_v23 = vmax.f32 %v168_v20, 0.0  ;;  %v288_v24 = vpop.f32.mrb[3].mxu1 }
 0x1b8   :  { %v174_v25 = vpack.c.bf16 %v173_v23, %v173_v23 }
 0x1ba   :  { %294 = vmatmul.mubr.msk.bf16.vlgmr.msra.gmra.mrb[4].mxu0 %vm198_vm3, %v174_v25 }
 0x28d   :  { %v236_v27 = vpop.f32.mrb[4].mxu0 }
 0x28e   :  { %v237_v28 = vadd.f32 %v257_v26, %v236_v27  ;;  %v295_v29 = vpop.f32.mrb[5].mxu0 }
 0x28f   :  { %v239_v30 = vpop.f32.mrb[6].mxu0 }
 0x290   :  { %243 = vst.msk [vmem:[%s391_s7] sm:$0xff] %vm242_vm4, %v237_v28  ;;  %v296_v31 = vpop.f32.mrb[7].mxu0 }

</bundles_post_ra>
